<compile_context>
chip_gen: v6e
topology: v6e:2x2x1
jax: 0.10.0
libtpu: 0.0.40
codegen_flags: <defaults>
</compile_context>

<pallas_src>
import functools

import jax
import jax.numpy as jnp
from jax.experimental import pallas as pl
from jax.experimental.pallas import tpu as pltpu


def _round_up(x, m):
    return (x + m - 1) // m * m


def _vmem_capacity_bytes():
    """Generation-aware VMEM size (64 MiB on v7x, 128 MiB on v5e/v6e)."""
    try:
        return int(pltpu.get_tpu_info().vmem_capacity_bytes)
    except Exception:
        return 64 * 1024 * 1024  # conservative fallback (v7x per-TC)


def _causal_conv1d_kernel(x_ref, w_ref, b_ref, o_ref, *scratch, dilation,
                          k_taps, fuse_taps):
    # Grid = (B, T-tiles, C_out-tiles), c innermost.
    #   x_ref : (1, C_in, tT)      current time tile (resident across all c)
    #   w_ref : (co_t, K*C_in)     fused weight (K folded into the contraction)
    #   b_ref : (co_t, 1)          bias, f32
    #   o_ref : (1, co_t, tT)      output tile
    # scratch (only when K > 1):
    #   carry_ref : (C_in, halo)   trailing halo columns of the previous time
    #                              tile; zeros at t == 0 (== the causal pad)
    #   win_ref   : (K*C_in, tT)   im2col operand      (fuse_taps=True)
    #               (C_in, tT+halo) padded window      (fuse_taps=False)
    t = pl.program_id(1)
    c = pl.program_id(2)
    x_tile = x_ref[0]                       # (C_in, tT)
    c_in, t_tile = x_tile.shape
    halo = (k_taps - 1) * dilation

    if k_taps == 1:
        acc = jnp.dot(w_ref[...], x_tile, preferred_element_type=jnp.float32)
        o_ref[0] = (acc + b_ref[...]).astype(o_ref.dtype)
        return

    carry_ref, win_ref = scratch

    # Carry reset at the start of every batch's time sweep.
    @pl.when(jnp.logical_and(t == 0, c == 0))
    def _():
        carry_ref[...] = jnp.zeros_like(carry_ref)

    # Build the shared window / im2col operand ONCE per (b, t) tile; it is then
    # reused for every C_out tile.  Requires sequential in-order iteration of
    # the t and c axes ("arbitrary"); do NOT mark them "parallel".
    @pl.when(c == 0)
    def _build():
        # Window covering [tile_start - halo, tile_start + tT).
        window = jnp.concatenate([carry_ref[...], x_tile], axis=-1)
        # New carry = trailing halo columns (correct even when halo > tT).
        carry_ref[...] = window[:, t_tile:t_tile + halo]
        if fuse_taps:
            # im2col: stack the K shifted views on sublanes -> (K*C_in, tT),
            # so all taps fuse into ONE MXU contraction.
            win_ref[...] = jnp.concatenate(
                [window[:, k * dilation:k * dilation + t_tile]
                 for k in range(k_taps)], axis=0)
        else:
            win_ref[...] = window

    if fuse_taps:
        acc = jnp.dot(w_ref[...], win_ref[...],
                      preferred_element_type=jnp.float32)
    else:
        # C_in already fills the MXU contraction depth: K accumulating dots on
        # static slices, no (K*C_in, tT) im2col materialization.
        acc = jnp.dot(w_ref[:, :c_in], win_ref[:, :t_tile],
                      preferred_element_type=jnp.float32)
        for k in range(1, k_taps):
            acc += jnp.dot(w_ref[:, k * c_in:(k + 1) * c_in],
                           win_ref[:, k * dilation:k * dilation + t_tile],
                           preferred_element_type=jnp.float32)
    o_ref[0] = (acc + b_ref[...]).astype(o_ref.dtype)


def causal_conv1d(x, weight, bias, *, dilation=1, stride=1, groups=1,
                  time_tile=None, co_tile=None, fuse_taps=None):
    """Causal 1D conv: left-pad (K-1)*dilation zeros, then Conv1d (stride=1).

    x: (B, C_in, T); weight: (C_out, C_in, K); bias: (C_out,). Returns (B, C_out, T).
    """
    B, C_in, T = x.shape
    C_out, C_in_w, K = weight.shape
    assert C_in_w == C_in
    # TODO(synk): groups>1 / stride>1 not implemented in-kernel.
    assert stride == 1 and groups == 1, "only stride=1, groups=1 supported"

    halo = (K - 1) * dilation
    itemsize = jnp.dtype(x.dtype).itemsize

    # ---- generation-aware VMEM budget ---------------------------------------
    vmem_cap = _vmem_capacity_bytes()
    budget = int(vmem_cap * 0.40)          # working-set target
    vmem_limit = int(vmem_cap * 0.75)      # scoped limit handed to Mosaic

    # Fuse taps into one contraction only when C_in alone does not fill the MXU
    # contraction depth (256 on v6e/v7x; set fuse_taps explicitly for v5e=128).
    if fuse_taps is None:
        fuse_taps = (K > 1) and (C_in < 256)
    fuse_taps = bool(fuse_taps) and K > 1

    # ---- tile selection -----------------------------------------------------
    # dtype-aware sublane packing: 8 rows f32, 16 bf16, 32 int8/fp8.
    sub_mult = max(8, 32 // itemsize)

    if co_tile is None:
        co_full = _round_up(C_out, sub_mult)
        w_full_bytes = 2 * co_full * K * C_in * itemsize   # double-buffered
        if w_full_bytes <= budget // 2:
            co_tile = co_full                 # single C_out tile, weight resident
        else:
            co_tile = min(co_full, _round_up(256, sub_mult))
    co_tile = _round_up(co_tile, sub_mult)
    C_out_p = _round_up(C_out, co_tile)
    n_c = C_out_p // co_tile

    # Deeper input pipelining when compute per tile is tiny (HBM-bound regime).
    x_buffers = 3 if C_in * K <= 256 else 2

    if time_tile is None:
        win_lanes = (K * C_in if fuse_taps else C_in) * itemsize   # scratch
        per_lane = (x_buffers * C_in * itemsize          # x pipeline buffers
                    + 2 * co_tile * itemsize             # double-buffered output
                    + win_lanes                          # window / im2col scratch
                    + (K + 1) * C_in * itemsize          # concat temporaries
                    + co_tile * 4)                       # f32 accumulator temp
        fixed = 2 * co_tile * K * C_in * itemsize + 2 * co_tile * 4
        avail = max(budget - fixed, 128 * per_lane)
        time_tile = max(128, (avail // per_lane) // 128 * 128)
        time_tile = min(time_tile, 1024)
    time_tile = _round_up(time_tile, 128)
    time_tile = min(time_tile, _round_up(T, 128))
    T_p = _round_up(T, time_tile)
    n_t = T_p // time_tile

    # ---- wrapper-side layout plumbing ---------------------------------------
    x_p = jnp.pad(x, ((0, 0), (0, 0), (0, T_p - T))) if T_p != T else x
    # (C_out, C_in, K) -> (C_out, K, C_in) -> (C_out, K*C_in): keeps tiny K off
    # the 128-lane axis and puts each tap's C_in block on a contiguous lane span.
    w2 = weight.astype(x.dtype).transpose(0, 2, 1).reshape(C_out, K * C_in)
    if C_out_p != C_out:
        w2 = jnp.pad(w2, ((0, C_out_p - C_out), (0, 0)))
    b2 = bias.astype(jnp.float32)
    if C_out_p != C_out:
        b2 = jnp.pad(b2, (0, C_out_p - C_out))
    b2 = b2.reshape(C_out_p, 1)

    grid = (B, n_t, n_c)
    kernel = functools.partial(_causal_conv1d_kernel, dilation=dilation,
                               k_taps=K, fuse_taps=fuse_taps)

    if K > 1:
        win_shape = (K * C_in, time_tile) if fuse_taps else (C_in, time_tile + halo)
        scratch = [pltpu.VMEM((C_in, halo), x.dtype),
                   pltpu.VMEM(win_shape, x.dtype)]
        # t and c must iterate sequentially (carry + shared window scratch).
        dims = ("parallel", "arbitrary", "arbitrary")
    else:
        scratch = []
        dims = ("parallel", "parallel", "parallel")

    # Honest HBM traffic: x read once; weight re-fetched per time tile when the
    # C_out axis is tiled (n_c > 1).
    w_bytes = int(w2.size) * itemsize
    w_reads = 1 if n_c == 1 else B * n_t
    cost = pl.CostEstimate(
        flops=2 * B * C_out * C_in * K * T,
        transcendentals=0,
        bytes_accessed=int(x_p.size) * itemsize + w_reads * w_bytes
        + int(b2.size) * 4 + B * C_out_p * T_p * itemsize)

    w_spec = pl.BlockSpec((co_tile, K * C_in), lambda b, t, c: (c, 0))
    b_spec = pl.BlockSpec((co_tile, 1), lambda b, t, c: (c, 0))
    out_spec = pl.BlockSpec((1, co_tile, time_tile), lambda b, t, c: (b, c, t))

    def _call(x_spec):
        return pl.pallas_call(
            kernel,
            out_shape=jax.ShapeDtypeStruct((B, C_out_p, T_p), x.dtype),
            grid_spec=pltpu.PrefetchScalarGridSpec(
                num_scalar_prefetch=0,
                grid=grid,
                in_specs=[x_spec, w_spec, b_spec],
                out_specs=out_spec,
                scratch_shapes=scratch),
            compiler_params=pltpu.CompilerParams(
                dimension_semantics=dims,
                vmem_limit_bytes=vmem_limit),
            cost_estimate=cost,
        )(x_p, w2, b2)

    if x_buffers > 2:
        try:
            y = _call(pl.BlockSpec((1, C_in, time_tile), lambda b, t, c: (b, 0, t),
                                   pipeline_mode=pl.Buffered(x_buffers)))
        except Exception:
            # Fallback: default double-buffering if deeper pipelining is rejected.
            y = _call(pl.BlockSpec((1, C_in, time_tile), lambda b, t, c: (b, 0, t)))
    else:
        y = _call(pl.BlockSpec((1, C_in, time_tile), lambda b, t, c: (b, 0, t)))

    return y[:, :C_out, :T]


def causal_conv1d_ref(x, weight, bias, *, dilation=1):
    """Pure-JAX reference (matches PyTorch CausalConv1d forward)."""
    K = weight.shape[2]
    pad_length = (K - 1) * dilation
    y = jax.lax.conv_general_dilated(
        x, weight,
        window_strides=(1,),
        padding=[(pad_length, 0)],
        rhs_dilation=(dilation,),
        dimension_numbers=("NCH", "OIH", "NCH"),
    )
    return y + bias[None, :, None]


if __name__ == "__main__":
    # Module config (deterministic, synthetic — no checkpoint load).
    B, C_in, C_out, T = 2, 4, 6, 16
    K, dilation = 3, 2

    key = jax.random.PRNGKey(0)
    kx, kw, kb = jax.random.split(key, 3)
    x = jax.random.normal(kx, (B, C_in, T), dtype=jnp.float32)
    weight = jax.random.normal(kw, (C_out, C_in, K), dtype=jnp.float32) * 0.1
    bias = jax.random.normal(kb, (C_out,), dtype=jnp.float32) * 0.1

    # f32 path, single time tile, single C_out tile, fused-tap (im2col) branch.
    y = jax.block_until_ready(causal_conv1d(x, weight, bias, dilation=dilation))
    y_ref = causal_conv1d_ref(x, weight, bias, dilation=dilation)
    assert y.shape == (B, C_out, T)
    assert jnp.allclose(y, y_ref, atol=1e-5, rtol=1e-5), "f32 mismatch vs reference"

    # Multi-time-tile path: exercises the halo-carry across time tiles.
    T2 = 512
    x2 = jax.random.normal(kx, (B, C_in, T2), dtype=jnp.float32)
    y2 = jax.block_until_ready(
        causal_conv1d(x2, weight, bias, dilation=dilation, time_tile=128))
    y2_ref = causal_conv1d_ref(x2, weight, bias, dilation=dilation)
    assert jnp.allclose(y2, y2_ref, atol=1e-5, rtol=1e-5), "tiled mismatch vs reference"

    # bf16 operand path (MXU-native, 16-row sublane packing); f32 accumulation.
    yb = jax.block_until_ready(
        causal_conv1d(x2.astype(jnp.bfloat16), weight.astype(jnp.bfloat16),
                      bias, dilation=dilation, time_tile=128))
    assert jnp.allclose(yb.astype(jnp.float32), y2_ref, atol=5e-2, rtol=5e-2), \
        "bf16 mismatch vs reference"

    # Multi-C_out-tile (c innermost, shared window scratch reused across c) and
    # the non-fused K-accumulating-dots branch.
    C_out3 = 24
    w3 = jax.random.normal(kw, (C_out3, C_in, K), dtype=jnp.float32) * 0.1
    b3 = jax.random.normal(kb, (C_out3,), dtype=jnp.float32) * 0.1
    y3 = jax.block_until_ready(
        causal_conv1d(x2, w3, b3, dilation=dilation, time_tile=128,
                      co_tile=8, fuse_taps=False))
    y3_ref = causal_conv1d_ref(x2, w3, b3, dilation=dilation)
    assert jnp.allclose(y3, y3_ref, atol=1e-4, rtol=1e-4), \
        "multi-C_out / unfused mismatch vs reference"

    print("KERNEL_OK")
</pallas_src>

<mosaic_0001>
module attributes {stable_mosaic.version = 11 : i64} {
  func.func @_causal_conv1d_kernel(%arg0: i32, %arg1: i32, %arg2: i32, %arg3: memref<1x4x128xf32, #tpu.memory_space<vmem>>, %arg4: memref<8x12xf32, #tpu.memory_space<vmem>>, %arg5: memref<8x1xf32, #tpu.memory_space<vmem>>, %arg6: memref<1x8x128xf32, #tpu.memory_space<vmem>>, %arg7: memref<4x4xf32, #tpu.memory_space<vmem>>, %arg8: memref<12x128xf32, #tpu.memory_space<vmem>>) attributes {dimension_semantics = [#tpu.dimension_semantics<parallel>, #tpu.dimension_semantics<arbitrary>, #tpu.dimension_semantics<arbitrary>], iteration_bounds = array<i64: 2, 1, 1>, scalar_prefetch = 0 : i64, scratch_operands = 2 : i64, tpu.core_type = #tpu.core_type<tc>, window_params = [{transform_indices = @transform_0, window_bounds = array<i64: 1, 4, 128>}, {transform_indices = @transform_1, window_bounds = array<i64: 8, 12>}, {transform_indices = @transform_2, window_bounds = array<i64: 8, 1>}, {transform_indices = @transform_3, window_bounds = array<i64: 1, 8, 128>}]} {
    %c0 = arith.constant 0 : index
    %c0_0 = arith.constant 0 : index
    %c0_1 = arith.constant 0 : index
    %0 = vector.load %arg3[%c0, %c0_0, %c0_1] : memref<1x4x128xf32, #tpu.memory_space<vmem>>, vector<1x4x128xf32>
    %1 = vector.shape_cast %0 : vector<1x4x128xf32> to vector<4x128xf32>
    %c0_i32 = arith.constant 0 : i32
    %2 = arith.cmpi eq, %arg1, %c0_i32 : i32
    %c0_i32_2 = arith.constant 0 : i32
    %3 = arith.cmpi eq, %arg2, %c0_i32_2 : i32
    %4 = arith.andi %2, %3 : i1
    %5 = arith.extui %4 : i1 to i32
    %c0_i32_3 = arith.constant 0 : i32
    %6 = arith.cmpi ne, %5, %c0_i32_3 : i32
    scf.if %6 {
      %cst_15 = arith.constant 0.000000e+00 : f32
      %19 = vector.broadcast %cst_15 : f32 to vector<4x4xf32>
      %c0_16 = arith.constant 0 : index
      %c0_17 = arith.constant 0 : index
      %20 = vector.load %arg7[%c0_16, %c0_17] : memref<4x4xf32, #tpu.memory_space<vmem>>, vector<4x4xf32>
      tpu.vector_store %arg7[%c0_16, %c0_17], %19 {strides = array<i32>} : memref<4x4xf32, #tpu.memory_space<vmem>>, vector<4x4xf32>,
    } else {
    }
    %c0_i32_4 = arith.constant 0 : i32
    %7 = arith.cmpi eq, %arg2, %c0_i32_4 : i32
    %8 = arith.extui %7 : i1 to i32
    %c0_i32_5 = arith.constant 0 : i32
    %9 = arith.cmpi ne, %8, %c0_i32_5 : i32
    scf.if %9 {
      %c0_15 = arith.constant 0 : index
      %c0_16 = arith.constant 0 : index
      %19 = vector.load %arg7[%c0_15, %c0_16] : memref<4x4xf32, #tpu.memory_space<vmem>>, vector<4x4xf32>
      %20 = tpu.concatenate %19, %1 in 1 : vector<4x4xf32>, vector<4x128xf32> -> vector<4x132xf32>
      %21 = vector.extract_strided_slice %20 {offsets = [0, 128], sizes = [4, 4], strides = [1, 1]} : vector<4x132xf32> to vector<4x4xf32>
      %c0_17 = arith.constant 0 : index
      %c0_18 = arith.constant 0 : index
      %22 = vector.load %arg7[%c0_17, %c0_18] : memref<4x4xf32, #tpu.memory_space<vmem>>, vector<4x4xf32>
      tpu.vector_store %arg7[%c0_17, %c0_18], %21 {strides = array<i32>} : memref<4x4xf32, #tpu.memory_space<vmem>>, vector<4x4xf32>,
      %23 = vector.extract_strided_slice %20 {offsets = [0, 0], sizes = [4, 128], strides = [1, 1]} : vector<4x132xf32> to vector<4x128xf32>
      %24 = vector.extract_strided_slice %20 {offsets = [0, 2], sizes = [4, 128], strides = [1, 1]} : vector<4x132xf32> to vector<4x128xf32>
      %25 = vector.extract_strided_slice %20 {offsets = [0, 4], sizes = [4, 128], strides = [1, 1]} : vector<4x132xf32> to vector<4x128xf32>
      %26 = tpu.concatenate %23, %24, %25 in 0 : vector<4x128xf32>, vector<4x128xf32>, vector<4x128xf32> -> vector<12x128xf32>
      %c0_19 = arith.constant 0 : index
      %c0_20 = arith.constant 0 : index
      %27 = vector.load %arg8[%c0_19, %c0_20] : memref<12x128xf32, #tpu.memory_space<vmem>>, vector<12x128xf32>
      tpu.vector_store %arg8[%c0_19, %c0_20], %26 {strides = array<i32>} : memref<12x128xf32, #tpu.memory_space<vmem>>, vector<12x128xf32>,
    } else {
    }
    %c0_6 = arith.constant 0 : index
    %c0_7 = arith.constant 0 : index
    %10 = vector.load %arg4[%c0_6, %c0_7] : memref<8x12xf32, #tpu.memory_space<vmem>>, vector<8x12xf32>
    %c0_8 = arith.constant 0 : index
    %c0_9 = arith.constant 0 : index
    %11 = vector.load %arg8[%c0_8, %c0_9] : memref<12x128xf32, #tpu.memory_space<vmem>>, vector<12x128xf32>
    %cst = arith.constant dense<0.000000e+00> : vector<8x128xf32>
    %12 = tpu.matmul %10, %11, %cst {dimension_numbers = #tpu.dot_dimension_numbers<[1], [0], [0], [1], [0, 0, 1, 1], [], []>} : vector<8x12xf32>, vector<12x128xf32>, vector<8x128xf32> -> vector<8x128xf32>
    %c0_10 = arith.constant 0 : index
    %c0_11 = arith.constant 0 : index
    %13 = vector.load %arg5[%c0_10, %c0_11] : memref<8x1xf32, #tpu.memory_space<vmem>>, vector<8x1xf32>
    %14 = vector.broadcast %13 : vector<8x1xf32> to vector<8x128xf32>
    %15 = arith.addf %12, %14 : vector<8x128xf32>
    %c0_12 = arith.constant 0 : index
    %c0_13 = arith.constant 0 : index
    %c0_14 = arith.constant 0 : index
    %16 = vector.load %arg6[%c0_12, %c0_13, %c0_14] : memref<1x8x128xf32, #tpu.memory_space<vmem>>, vector<1x8x128xf32>
    %17 = vector.shape_cast %16 : vector<1x8x128xf32> to vector<8x128xf32>
    %18 = vector.shape_cast %15 : vector<8x128xf32> to vector<1x8x128xf32>
    tpu.vector_store %arg6[%c0_12, %c0_13, %c0_14], %18 {strides = array<i32>} : memref<1x8x128xf32, #tpu.memory_space<vmem>>, vector<1x8x128xf32>,
    return
  }
  func.func @transform_0(%arg0: i32, %arg1: i32, %arg2: i32) -> (i32, i32, i32) {
    %c0_i32 = arith.constant 0 : i32
    %c0_i32_0 = arith.constant 0 : i32
    return %arg0, %c0_i32, %arg1 : i32, i32, i32
  }
  func.func @transform_1(%arg0: i32, %arg1: i32, %arg2: i32) -> (i32, i32) {
    %c0_i32 = arith.constant 0 : i32
    %c0_i32_0 = arith.constant 0 : i32
    return %arg2, %c0_i32 : i32, i32
  }
  func.func @transform_2(%arg0: i32, %arg1: i32, %arg2: i32) -> (i32, i32) {
    %c0_i32 = arith.constant 0 : i32
    %c0_i32_0 = arith.constant 0 : i32
    return %arg2, %c0_i32 : i32, i32
  }
  func.func @transform_3(%arg0: i32, %arg1: i32, %arg2: i32) -> (i32, i32, i32) {
    %c0_i32 = arith.constant 0 : i32
    return %arg0, %arg2, %arg1 : i32, i32, i32
  }
}

</mosaic_0001>

<bundles_post_ra>
// kernel: tpu_custom_call.1
= control target key start
LH: loop header
LB: loop body
LE: loop exit
PB: predicated region body
PF: predicated region fallthrough
CT: control target
= control target key end

     0   :  { %8 = vsyncpa [#allocation5], 0  ;;  %s854_s0 = inlined_call_operand.vmem [shape: f32[2,4,128], index: 0, kind: input, shape index: {}]   ;;  %s855_s1 = inlined_call_operand.hbm [shape: f32[8,12], index: 1, kind: input, shape index: {}]   ;;  %s856_s2 = inlined_call_operand.vmem [shape: f32[8,1], index: 2, kind: input, shape index: {}]   ;;  %s857_s3 = inlined_call_operand.hbm [shape: f32[2,8,128], index: 3, kind: output, shape index: {}]  }
   0x1   :  { %9 = vsyncpa [#allocation6], 0 }
   0x2   :  { %11 = vsyncpa [#allocation6 + $0x1], 0  ;;  %s723_s12 = smov 0   ;;  %s725_s13 = smov 0  }
   0x3   :  { %s727_s14 = smov 0   ;;  %s729_s15 = smov 0  }
   0x4   :  { %s731_s16 = smov 0   ;;  %s733_s17 = smov 0  }
   0x5 LB: > { %s487_s18 = sadd.s32 4294967295, %s693_s17   ;;  %s488_s19 = sadd.s32 4294967294, %s693_s17   ;;  %s693_s17 = sphi %s733_s17, %s17_s17   ;;  %s689_s16 = sphi %s731_s16, %s866_s16   ;;  %s685_s15 = sphi %s729_s15, %s865_s15   ;;  %s681_s14 = sphi %s727_s14, %s864_s14   ;;  %s677_s13 = sphi %s725_s13, %s863_s13   ;;  %s673_s12 = sphi %s723_s12, %s862_s12  }
   0x6   : > { %s36_s20 = sadd.s32 1, %s689_s16  ;;  %s127_s21 = sadd.s32 1, %s681_s14 }
   0x7   : > { %p38_p0 = scmp.ge.s32.totalorder %s36_s20, 2  ;;  %p137_p1 = scmp.ne.s32.totalorder %s681_s14, %s677_s13 }
   0x8   : > { %p138_p2 = scmp.eq.s32.totalorder %s487_s18, 1  ;;  %p143_p3 = scmp.ne.s32.totalorder %s677_s13, %s673_s12 }
   0x9   : > { %s868_s20 = smov (%p38_p0, %s36_s20), 0  ;;  %p144_p5 = scmp.eq.s32.totalorder %s488_s19, 1 }
   0xa   : > { %p763_p4 = por %p138_p2, %p137_p1  ;;  %s120_s23 = ssub.s32 %s689_s16, %s868_s20 }
   0xb   : > { %p489_p6 = scmp.ge.s32.totalorder %s693_s17, 1  ;;  %p125_p7 = scmp.eq.s32.totalorder %s120_s23, 0 }
   0xc   : > { %p770_p8 = por %p144_p5, %p143_p3  ;;  %p151_p9 = scmp.lt.s32.totalorder %s693_s17, 3 }
   0xd   : > { %s776_s25 = scalar_select %p125_p7, %s681_s14, %s127_s21  }
   0xe   : > { %p778_p10 = pnand %p489_p6, %p151_p9  ;;  %p782_p11 = scmp.eq.s32.totalorder %s487_s18, 0 }
   0xf   : > { %s695_s28 = smov [#allocation4]  }
  0x10   : > { %p519_p12 = pneg %p778_p10  ;;  %s166_s29 = sshll.u32 %s695_s28, 4  ;;  %s167_s29 = int_to_ptr.vmem [resolvable:$true] %s166_s29 }
  0x11   : > { %s598_s30 = scalar_lea.vmem %s167_s29, 128  ;;  %p606_p5 = scmp.lt.s32.totalorder %s167_s29, %s167_s29 }
  0x12   : > { %p520_p13 = pnand %p782_p11, %p519_p12  ;;  %p599_p1 = scmp.ne.s32.totalorder %s167_s29, %s598_s30 }
  0x13   : > { %p607_p6 = scmp.lt.s32.totalorder %s598_s30, %s598_s30 }
  0x14   : > { %p589_p0 = pneg %p520_p13 }
  0x15   : > { %p608_p7 = por %p607_p6, %p606_p5 }
  0x16   : > { %p601_p2 = pnand %p599_p1, %p589_p0 }
  0x18   : > { %p602_p3 = pneg %p601_p2 }
  0x1a   : > { %p609_p9 = pnand %p608_p7, %p602_p3 }
  0x1c   : > { %612 = shalt.err (!%p609_p9)
}
  0x1d   : > { %522 = dma.hbm_to_vmem [thread:$0]  (!%p520_p13), %s855_s1, 128, %s167_s29, [#allocation5]  }
  0x1e   : > { %196 = sbr.rel (%p778_p10) target bundleno = 494 (0x1ee), region = 32 }
  0x23   : > { %664 = dma.done.wait (%p782_p11), [#allocation5], 128  }
  0x24   : > { %666 = vsyncadd (%p782_p11), [#allocation5], 4294967168  ;;  %p226_p12 = scmp.lt.s32.totalorder %s685_s15, 1  ;;  %vm244_vm0 = vcmask 27648   ;;  %v696_v0 = vmov 0.0   ;;  %s697_s11 = smov 4  }
  0x25   : > { %245 = vst.msk [vmem:[#allocation2] sm:$0xf] %vm244_vm0, %v696_v0  ;;  %506 = vmatprep.subr.mxu0 %v696_v0  ;;  %vm254_vm1 = vcmask 31744   ;;  %vm698_vm2 = vmmov 0   ;;  %s699_s18 = smov 124   ;;  %v700_v6 = vmov 0  }
  0x26   : > { %s227_s6 = scalar_select %p226_p12, %s685_s15, 1  ;;  %510 = vmatprep.mubr.msk.f32.mxu0 %vm698_vm2, %v696_v0  ;;  %585 = vset.pattern.permute.xlu1 %v700_v6  ;;  %v282_v8 = vld [vmem:[%s856_s2] sm:$0xff]  ;;  %vm272_vm3 = vcmask 1014784   ;;  %vm265_vm4 = vcmask 1031168   ;;  %vm275_vm5 = vcmask 1043456   ;;  %v279_v17 = vld [vmem:[#allocation4] sm:$0xff] }
  0x27   : > { %586 = vset.pattern.permute.xlu0 %v700_v6  ;;  %s701_s19 = smov 126   ;;  %vm288_vm6 = vcmask 97280   ;;  %s223_s26 = sand.u32 1, %s677_s13  }
  0x28   : > { %s496_s7 = sshll.u32 %s227_s6, 2  ;;  %s495_s27 = sshll.u32 %s223_s26, 3 }
  0x29   : > { %s232_s10 = scalar_lea.vmem %s854_s0, %s496_s7  ;;  %s500_s28 = sshll.u32 %s685_s15, 7 }
  0x2a   : > { %v237_v1 = vld [vmem:[%s232_s10] sm:$0xf]  ;;  %s225_s29 = scalar_lea.vmem [#allocation7], %s495_s27  ;;  %s814_s6 = scalar_lea.hbm %s857_s3, %s500_s28 }
  0x2b   : > { %251 = vrot.lane.b32.xlu0 %v237_v1, %s697_s11  ;;  %s383_s30 = sshll.u32 %s225_s29, 4  ;;  %s368_s7 = scalar_lea.sflag [#allocation6], %s223_s26  ;;  %s384_s30 = int_to_ptr.vmem [resolvable:$true] %s383_s30 }
  0x2c   : > { %v249_v2 = vld [vmem:[#allocation2] sm:$0xf]  ;;  %s613_s8 = scalar_lea.vmem %s384_s30, 128  ;;  %s702_s9 = smov [#allocation7]  }
  0x2d   : > { %p614_p10 = scmp.ne.s32.totalorder %s384_s30, %s613_s8  ;;  %s617_s15 = sshll.u32 %s702_s9, 4  ;;  %s618_s15 = int_to_ptr.vmem [resolvable:$false] %s617_s15 }
  0x2e   : > { %s619_s10 = scalar_lea.vmem %s618_s15, 256  ;;  %p620_p0 = scmp.lt.s32.totalorder %s384_s30, %s618_s15 }
  0x2f   : > { %p615_p11 = pnand %p614_p10, %p763_p4  ;;  %p621_p1 = scmp.lt.s32.totalorder %s619_s10, %s613_s8 }
  0x31   : > { %p616_p13 = pneg %p615_p11  ;;  %p622_p2 = por %p621_p1, %p620_p0 }
  0x33   : > { %p623_p3 = pnand %p622_p2, %p616_p13 }
  0x9d   : > { %v252_v3 = vpop.permute.xlu0 %251 }
  0x9e   : > { %270 = vrot.lane.b32.xlu1 %v252_v3, %s699_s18  ;;  %v255_v4 = vsel %vm254_vm1, %v249_v2, %v252_v3  ;;  %257 = vst.msk [vmem:[#allocation2] sm:$0xf] %vm244_vm0, %v252_v3  ;;  %v260_v7 = vrot.slane %v252_v3, 4 }
  0x9f   : > { %268 = vrot.lane.b32.xlu0 %v255_v4, %s699_s18  ;;  %v259_v5 = vrot.slane %v255_v4, 4 }
  0xa2   : > { %261 = vrot.lane.b32.xlu1 %v259_v5, %s701_s19 }
  0xa3   : > { %263 = vrot.lane.b32.xlu0 %v260_v7, %s701_s19 }
  0xa6   : > { %285 = vperm.xlu1 %585, %v282_v8  }
 0x110   : > { %v271_v9 = vpop.permute.xlu1 %270 }
 0x111   : > { %v269_v10 = vpop.permute.xlu0 %268 }
 0x112   : > { %v273_v11 = vsel %vm272_vm3, %v269_v10, %v271_v9 }
 0x113   : > { %278 = vst [vmem:[#allocation3 + $0x8] sm:$0xf] %v273_v11 }
 0x114   : > { %v262_v12 = vpop.permute.xlu1 %261 }
 0x115   : > { %v264_v13 = vpop.permute.xlu0 %263 }
 0x116   : > { %v266_v14 = vsel %vm265_vm4, %v262_v12, %v264_v13 }
 0x117   : > { %v276_v15 = vsel %vm275_vm5, %v255_v4, %v266_v14 }
 0x11a   : > { %v281_v16 = vld [vmem:[#allocation3 + $0x8] sm:$0xf] }
 0x11b   : > { %507 = vmatpush3.msk.msra.mxu0 %vm275_vm5, %v281_v16 }
 0x11c   : > { %508 = vmatprep.subr.mxu0 %v696_v0 }
 0x11d   : > { %509 = vmatpush3.msra.mxu0 %v276_v15 }
 0x11e   : > { %511 = vmatmul.mubr.msk.f32.vlgmr.msra.gmra.mxu0 %vm288_vm6, %v279_v17 }
 0x121   : > { %v286_v18 = vpop.permute.xlu1 %285 }
 0x1de   : > { %v362_v19 = vpop.f32.mrf.mxu0 }
 0x1df   : > { %v363_v20 = vadd.f32 %v362_v19, %v286_v18 }
 0x1e0   : > { %v512_v21 = vpop.f32.mrf.mxu0 }
 0x1e1   : > { %366 = vst [vmem:[%s225_s29] sm:$0xff] %v363_v20 }
 0x1e2   : > { %626 = shalt.err (!%p623_p3)
}
 0x1e3   : > { %s627_s11 = scalar_lea.hbm %s814_s6, 128  ;;  %s631_s21 = scalar_lea.hbm %s857_s3, 256 }
 0x1e4   : > { %p628_p5 = scmp.ne.s32.totalorder %s814_s6, %s627_s11  ;;  %p632_p9 = scmp.lt.s32.totalorder %s814_s6, %s857_s3 }
 0x1e5   : > { %p633_p12 = scmp.lt.s32.totalorder %s631_s21, %s627_s11 }
 0x1e6   : > { %p629_p6 = pnand %p628_p5, %p763_p4 }
 0x1e7   : > { %p634_p10 = por %p633_p12, %p632_p9 }
 0x1e8   : > { %p630_p7 = pneg %p629_p6 }
 0x1ea   : > { %p635_p11 = pnand %p634_p10, %p630_p7 }
 0x1ec   : > { %638 = shalt.err (!%p635_p11)
}
 0x1ed   : > { %517 = dma.vmem_to_hbm [thread:$0]  (%p763_p4), %s384_s30, 128, %s814_s6, %s368_s7  }
 0x1ee PF: > { %p529_p13 = scmp.ge.s32.totalorder %s693_s17, 2  ;;  %s395_s27 = sand.u32 1, %s673_s12  }
 0x1ef   : > { %s396_s28 = scalar_lea.sflag [#allocation6], %s395_s27 }
 0x1f0   : > { %p524_p0 = pnand %p529_p13, %p770_p8 }
 0x1f2   : > { %p525_p1 = pneg %p524_p0 }
 0x1f4   : > { %668 = dma.done.wait (%p525_p1), %s396_s28, 128  }
 0x1f5   : > { %670 = vsyncadd (%p525_p1), %s396_s28, 4294967168  ;;  %s17_s17 = sadd.s32 1, %s693_s17   ;;  %s862_s12 = smov %s677_s13 }
 0x1f6   : > { %p14_p2 = scmp.ge.s32.totalorder %s17_s17, 4   ;;  %s863_s13 = smov %s681_s14 }
 0x1f7   : > { %s864_s14 = smov %s776_s25  ;;  %s865_s15 = smov %s689_s16 }
 0x1f8   : > { %s866_s16 = smov %s868_s20  ;;  %16 = sbr.rel (!%p14_p2) target bundleno = 5 (0x5), region = 84 }
 0x1fd   :  { %401 = vsyncpa [#allocation5], 1 }
 0x1fe   :  { %403 = vsyncpa [#allocation5 + $0x1], 1 }
 0x1ff   :  { %404 = vsyncpa [#allocation6], 1 }
 0x200   :  { %406 = vsyncpa [#allocation6 + $0x1], 1 }

</bundles_post_ra>
